<compile_context>
chip_gen: v7x
topology: tpu7x:2x2x1
jax: 0.10.0
libtpu: 0.0.40
codegen_flags: <defaults>
</compile_context>

<pallas_src>
import jax
import jax.numpy as jnp
from jax import lax
from jax.experimental import pallas as pl
from jax.experimental.pallas import tpu as pltpu

EPS = 1e-8       # torch.nn.CosineSimilarity default eps
DEFAULT_WEIGHT = 0.5


def _round_up(x: int, m: int) -> int:
    return ((x + m - 1) // m) * m


def _make_kernel(weight: float, inv_b: float):
    """Kernel factory: weight and 1/B are baked in as compile-time constants."""

    w1 = float(weight)
    w2 = 1.0 - float(weight)
    eps_sq = EPS * EPS

    def kernel(p1_ref, p2_ref, z1_ref, z2_ref, out_ref, acc_ref):
        i = pl.program_id(0)

        @pl.when(i == 0)
        def _init():
            acc_ref[0] = jnp.float32(0.0)

        # Load (TB, D) tiles; compute in f32 regardless of input dtype.
        p1 = p1_ref[...].astype(jnp.float32)
        p2 = p2_ref[...].astype(jnp.float32)
        z1 = z1_ref[...].astype(jnp.float32)
        z2 = z2_ref[...].astype(jnp.float32)

        def neg_cos_sum(a, b):
            # Keep reductions 2-D: (TB, 1) stays in native sublane layout.
            dot = jnp.sum(a * b, axis=-1, keepdims=True)      # (TB, 1)
            na2 = jnp.sum(a * a, axis=-1, keepdims=True)      # (TB, 1)
            nb2 = jnp.sum(b * b, axis=-1, keepdims=True)      # (TB, 1)
            # rsqrt(max(n^2, eps^2)) == 1 / max(||x||, eps)  (EUP, not VPU div)
            cos = dot * lax.rsqrt(jnp.maximum(na2, eps_sq)) \
                      * lax.rsqrt(jnp.maximum(nb2, eps_sq))
            # Column sum over this tile's rows -> scalar partial.
            return -jnp.sum(cos)

        partial = w1 * neg_cos_sum(p1, z2) + w2 * neg_cos_sum(p2, z1)
        acc_ref[0] = acc_ref[0] + partial * inv_b

        @pl.when(i == pl.num_programs(0) - 1)
        def _finalize():
            out_ref[0, 0] = acc_ref[0]

    return kernel


def _auto_tile(B: int, D: int, itemsize: int,
               vmem_budget_bytes: int = 24 * 1024 * 1024,
               tb_max: int = 512) -> int:
    """Pick a batch tile so 4 inputs x 2 pipeline buffers stay under budget."""
    tb = vmem_budget_bytes // (4 * 2 * D * itemsize)
    tb = max(8, min(tb_max, (tb // 8) * 8))
    tb = min(tb, _round_up(B, 8))
    return int(tb)


def simsiam_loss(inputs, weight: float = DEFAULT_WEIGHT, stopgrad: bool = True,
                 tile_b: int | None = None):
    """Pallas implementation of SimSiamLoss.forward.

    inputs: dict with 'p1', 'p2', 'z1', 'z2', each of shape (B, D)
            (f32 or bf16). Returns a scalar float32 loss.
    """
    p1, p2, z1, z2 = inputs["p1"], inputs["p2"], inputs["z1"], inputs["z2"]
    if stopgrad:
        z1 = lax.stop_gradient(z1)
        z2 = lax.stop_gradient(z2)

    B, D = p1.shape
    itemsize = jnp.dtype(p1.dtype).itemsize

    if tile_b is None:
        tb = _auto_tile(B, D, itemsize)
    else:
        tb = max(8, _round_up(int(tile_b), 8))
        tb = min(tb, _round_up(B, 8))

    b_pad = _round_up(B, tb)
    if b_pad != B:
        # Zero rows contribute exactly 0 to the cosine sums; mean uses true B.
        pad = ((0, b_pad - B), (0, 0))
        p1, p2, z1, z2 = (jnp.pad(x, pad) for x in (p1, p2, z1, z2))
    num_tiles = b_pad // tb

    # Raise the scoped VMEM limit only if the double-buffered inputs need it.
    dbuf_bytes = 4 * 2 * tb * D * itemsize
    vmem_limit = None
    if dbuf_bytes > 28 * 1024 * 1024:
        vmem_limit = int(min(64 * 1024 * 1024, dbuf_bytes + 4 * 1024 * 1024))

    kernel = _make_kernel(float(weight), 1.0 / float(B))
    tile_spec = pl.BlockSpec((tb, D), lambda i: (i, 0))

    out = pl.pallas_call(
        kernel,
        out_shape=jax.ShapeDtypeStruct((1, 1), jnp.float32),
        grid=(num_tiles,),
        in_specs=[tile_spec, tile_spec, tile_spec, tile_spec],
        out_specs=pl.BlockSpec(memory_space=pltpu.SMEM),
        scratch_shapes=[pltpu.SMEM((1,), jnp.float32)],
        compiler_params=pltpu.CompilerParams(
            dimension_semantics=("arbitrary",),
            vmem_limit_bytes=vmem_limit,
        ),
        cost_estimate=pl.CostEstimate(
            flops=int(12 * b_pad * D),
            transcendentals=int(4 * b_pad),
            bytes_accessed=int(4 * b_pad * D * itemsize + 4),
        ),
    )(p1, p2, z1, z2)
    return out[0, 0]


def _reference(inputs, weight: float = DEFAULT_WEIGHT):
    """Pure-JAX reference matching the PyTorch module's forward value."""

    def neg_cos_mean(a, b):
        a = a.astype(jnp.float32)
        b = b.astype(jnp.float32)
        dot = jnp.sum(a * b, axis=-1)
        na = jnp.sqrt(jnp.sum(a * a, axis=-1))
        nb = jnp.sqrt(jnp.sum(b * b, axis=-1))
        return -jnp.mean(dot / (jnp.maximum(na, EPS) * jnp.maximum(nb, EPS)))

    return weight * neg_cos_mean(inputs["p1"], inputs["z2"]) + (
        1.0 - weight
    ) * neg_cos_mean(inputs["p2"], inputs["z1"])


if __name__ == "__main__":
    def make_inputs(key, B, D, dtype):
        ks = jax.random.split(key, 4)
        names = ("p1", "p2", "z1", "z2")
        return {
            n: jax.random.normal(k, (B, D), dtype=jnp.float32).astype(dtype)
            for n, k in zip(names, ks)
        }

    # Case 1: single tile, f32, default weight.
    inp = make_inputs(jax.random.PRNGKey(0), 8, 128, jnp.float32)
    out = jax.block_until_ready(simsiam_loss(inp))
    ref = jax.block_until_ready(_reference(inp))
    assert jnp.allclose(out, ref, atol=1e-5, rtol=1e-5), (out, ref)

    # Case 2: multiple tiles + ragged batch (B=24, tile 16 -> padded last tile),
    # non-default weight.
    inp = make_inputs(jax.random.PRNGKey(1), 24, 256, jnp.float32)
    out = jax.block_until_ready(simsiam_loss(inp, weight=0.3, tile_b=16))
    ref = jax.block_until_ready(_reference(inp, weight=0.3))
    assert jnp.allclose(out, ref, atol=1e-5, rtol=1e-5), (out, ref)

    # Case 3: bf16 inputs (half the HBM traffic), f32 accumulation in-kernel.
    inp = make_inputs(jax.random.PRNGKey(2), 16, 128, jnp.bfloat16)
    out = jax.block_until_ready(simsiam_loss(inp, tile_b=8))
    ref = jax.block_until_ready(_reference(inp))
    assert jnp.allclose(out, ref, atol=1e-4, rtol=1e-4), (out, ref)

    print("KERNEL_OK")
</pallas_src>

<mosaic_0001>
module attributes {stable_mosaic.version = 11 : i64} {
  func.func @kernel(%arg0: i32, %arg1: memref<8x128xf32, #tpu.memory_space<vmem>>, %arg2: memref<8x128xf32, #tpu.memory_space<vmem>>, %arg3: memref<8x128xf32, #tpu.memory_space<vmem>>, %arg4: memref<8x128xf32, #tpu.memory_space<vmem>>, %arg5: memref<1x1xf32, #tpu.memory_space<smem>>, %arg6: memref<1xf32, #tpu.memory_space<smem>>) attributes {dimension_semantics = [#tpu.dimension_semantics<arbitrary>], iteration_bounds = array<i64: 1>, scalar_prefetch = 0 : i64, scratch_operands = 1 : i64, tpu.core_type = #tpu.core_type<tc>, window_params = [{transform_indices = @transform_0, window_bounds = array<i64: 8, 128>}, {transform_indices = @transform_1, window_bounds = array<i64: 8, 128>}, {transform_indices = @transform_2, window_bounds = array<i64: 8, 128>}, {transform_indices = @transform_3, window_bounds = array<i64: 8, 128>}, {transform_indices = @transform_4, window_bounds = array<i64: 1, 1>}]} {
    %c0_i32 = arith.constant 0 : i32
    %0 = arith.cmpi eq, %arg0, %c0_i32 : i32
    %1 = arith.extui %0 : i1 to i32
    %c0_i32_0 = arith.constant 0 : i32
    %2 = arith.cmpi ne, %1, %c0_i32_0 : i32
    scf.if %2 {
      %cst_28 = arith.constant 0.000000e+00 : f32
      %c0_29 = arith.constant 0 : index
      %61 = memref.load %arg6[%c0_29] : memref<1xf32, #tpu.memory_space<smem>>
      memref.store %cst_28, %arg6[%c0_29] : memref<1xf32, #tpu.memory_space<smem>>
    } else {
    }
    %c0 = arith.constant 0 : index
    %c0_1 = arith.constant 0 : index
    %3 = vector.load %arg1[%c0, %c0_1] : memref<8x128xf32, #tpu.memory_space<vmem>>, vector<8x128xf32>
    %c0_2 = arith.constant 0 : index
    %c0_3 = arith.constant 0 : index
    %4 = vector.load %arg2[%c0_2, %c0_3] : memref<8x128xf32, #tpu.memory_space<vmem>>, vector<8x128xf32>
    %c0_4 = arith.constant 0 : index
    %c0_5 = arith.constant 0 : index
    %5 = vector.load %arg3[%c0_4, %c0_5] : memref<8x128xf32, #tpu.memory_space<vmem>>, vector<8x128xf32>
    %c0_6 = arith.constant 0 : index
    %c0_7 = arith.constant 0 : index
    %6 = vector.load %arg4[%c0_6, %c0_7] : memref<8x128xf32, #tpu.memory_space<vmem>>, vector<8x128xf32>
    %7 = arith.mulf %3, %6 : vector<8x128xf32>
    %cst = arith.constant dense<0.000000e+00> : vector<8xf32>
    %8 = vector.multi_reduction <add>, %7, %cst [1] : vector<8x128xf32> to vector<8xf32>
    %9 = vector.shape_cast %8 : vector<8xf32> to vector<8x1xf32>
    %10 = arith.mulf %3, %3 : vector<8x128xf32>
    %cst_8 = arith.constant dense<0.000000e+00> : vector<8xf32>
    %11 = vector.multi_reduction <add>, %10, %cst_8 [1] : vector<8x128xf32> to vector<8xf32>
    %12 = vector.shape_cast %11 : vector<8xf32> to vector<8x1xf32>
    %13 = arith.mulf %6, %6 : vector<8x128xf32>
    %cst_9 = arith.constant dense<0.000000e+00> : vector<8xf32>
    %14 = vector.multi_reduction <add>, %13, %cst_9 [1] : vector<8x128xf32> to vector<8xf32>
    %15 = vector.shape_cast %14 : vector<8xf32> to vector<8x1xf32>
    %cst_10 = arith.constant 1.000000e-16 : f32
    %16 = vector.broadcast %cst_10 : f32 to vector<8x1xf32>
    %17 = arith.maximumf %12, %16 : vector<8x1xf32>
    %18 = math.rsqrt %17 : vector<8x1xf32>
    %19 = arith.mulf %9, %18 : vector<8x1xf32>
    %cst_11 = arith.constant 1.000000e-16 : f32
    %20 = vector.broadcast %cst_11 : f32 to vector<8x1xf32>
    %21 = arith.maximumf %15, %20 : vector<8x1xf32>
    %22 = math.rsqrt %21 : vector<8x1xf32>
    %23 = arith.mulf %19, %22 : vector<8x1xf32>
    %24 = vector.shape_cast %23 : vector<8x1xf32> to vector<1x8x1xf32>
    %cst_12 = arith.constant dense<0.000000e+00> : vector<1xf32>
    %25 = vector.multi_reduction <add>, %24, %cst_12 [1, 2] : vector<1x8x1xf32> to vector<1xf32>
    %26 = vector.shape_cast %25 : vector<1xf32> to vector<1x1x1xf32>
    %27 = vector.extract %26[0, 0, 0] : f32 from vector<1x1x1xf32>
    %cst_13 = arith.constant 0.000000e+00 : f32
    %28 = arith.subf %cst_13, %27 : f32
    %cst_14 = arith.constant 5.000000e-01 : f32
    %29 = arith.mulf %cst_14, %28 : f32
    %30 = arith.mulf %4, %5 : vector<8x128xf32>
    %cst_15 = arith.constant dense<0.000000e+00> : vector<8xf32>
    %31 = vector.multi_reduction <add>, %30, %cst_15 [1] : vector<8x128xf32> to vector<8xf32>
    %32 = vector.shape_cast %31 : vector<8xf32> to vector<8x1xf32>
    %33 = arith.mulf %4, %4 : vector<8x128xf32>
    %cst_16 = arith.constant dense<0.000000e+00> : vector<8xf32>
    %34 = vector.multi_reduction <add>, %33, %cst_16 [1] : vector<8x128xf32> to vector<8xf32>
    %35 = vector.shape_cast %34 : vector<8xf32> to vector<8x1xf32>
    %36 = arith.mulf %5, %5 : vector<8x128xf32>
    %cst_17 = arith.constant dense<0.000000e+00> : vector<8xf32>
    %37 = vector.multi_reduction <add>, %36, %cst_17 [1] : vector<8x128xf32> to vector<8xf32>
    %38 = vector.shape_cast %37 : vector<8xf32> to vector<8x1xf32>
    %cst_18 = arith.constant 1.000000e-16 : f32
    %39 = vector.broadcast %cst_18 : f32 to vector<8x1xf32>
    %40 = arith.maximumf %35, %39 : vector<8x1xf32>
    %41 = math.rsqrt %40 : vector<8x1xf32>
    %42 = arith.mulf %32, %41 : vector<8x1xf32>
    %cst_19 = arith.constant 1.000000e-16 : f32
    %43 = vector.broadcast %cst_19 : f32 to vector<8x1xf32>
    %44 = arith.maximumf %38, %43 : vector<8x1xf32>
    %45 = math.rsqrt %44 : vector<8x1xf32>
    %46 = arith.mulf %42, %45 : vector<8x1xf32>
    %47 = vector.shape_cast %46 : vector<8x1xf32> to vector<1x8x1xf32>
    %cst_20 = arith.constant dense<0.000000e+00> : vector<1xf32>
    %48 = vector.multi_reduction <add>, %47, %cst_20 [1, 2] : vector<1x8x1xf32> to vector<1xf32>
    %49 = vector.shape_cast %48 : vector<1xf32> to vector<1x1x1xf32>
    %50 = vector.extract %49[0, 0, 0] : f32 from vector<1x1x1xf32>
    %cst_21 = arith.constant 0.000000e+00 : f32
    %51 = arith.subf %cst_21, %50 : f32
    %cst_22 = arith.constant 5.000000e-01 : f32
    %52 = arith.mulf %cst_22, %51 : f32
    %53 = arith.addf %29, %52 : f32
    %c0_23 = arith.constant 0 : index
    %54 = memref.load %arg6[%c0_23] : memref<1xf32, #tpu.memory_space<smem>>
    %cst_24 = arith.constant 1.250000e-01 : f32
    %55 = arith.mulf %53, %cst_24 : f32
    %56 = arith.addf %54, %55 : f32
    %c0_25 = arith.constant 0 : index
    %57 = memref.load %arg6[%c0_25] : memref<1xf32, #tpu.memory_space<smem>>
    memref.store %56, %arg6[%c0_25] : memref<1xf32, #tpu.memory_space<smem>>
    %c0_i32_26 = arith.constant 0 : i32
    %58 = arith.cmpi eq, %arg0, %c0_i32_26 : i32
    %59 = arith.extui %58 : i1 to i32
    %c0_i32_27 = arith.constant 0 : i32
    %60 = arith.cmpi ne, %59, %c0_i32_27 : i32
    scf.if %60 {
      %c0_28 = arith.constant 0 : index
      %61 = memref.load %arg6[%c0_28] : memref<1xf32, #tpu.memory_space<smem>>
      %c0_29 = arith.constant 0 : index
      %c0_30 = arith.constant 0 : index
      %62 = memref.load %arg5[%c0_29, %c0_30] : memref<1x1xf32, #tpu.memory_space<smem>>
      memref.store %61, %arg5[%c0_29, %c0_30] : memref<1x1xf32, #tpu.memory_space<smem>>
    } else {
    }
    return
  }
  func.func @transform_0(%arg0: i32) -> (i32, i32) {
    %c0_i32 = arith.constant 0 : i32
    %c0_i32_0 = arith.constant 0 : i32
    return %arg0, %c0_i32 : i32, i32
  }
  func.func @transform_1(%arg0: i32) -> (i32, i32) {
    %c0_i32 = arith.constant 0 : i32
    %c0_i32_0 = arith.constant 0 : i32
    return %arg0, %c0_i32 : i32, i32
  }
  func.func @transform_2(%arg0: i32) -> (i32, i32) {
    %c0_i32 = arith.constant 0 : i32
    %c0_i32_0 = arith.constant 0 : i32
    return %arg0, %c0_i32 : i32, i32
  }
  func.func @transform_3(%arg0: i32) -> (i32, i32) {
    %c0_i32 = arith.constant 0 : i32
    %c0_i32_0 = arith.constant 0 : i32
    return %arg0, %c0_i32 : i32, i32
  }
  func.func @transform_4(%arg0: i32) -> (i32, i32) {
    %c0_i32 = arith.constant 0 : i32
    %c0_i32_0 = arith.constant 0 : i32
    %c0_i32_1 = arith.constant 0 : i32
    return %c0_i32, %c0_i32_0 : i32, i32
  }
}

</mosaic_0001>

<bundles_post_ra>
// kernel: tpu_custom_call.1
= control target key start
LH: loop header
LB: loop body
LE: loop exit
PB: predicated region body
PF: predicated region fallthrough
CT: control target
= control target key end

     0   :  { %9 = vsyncpa [#allocation4], 0  ;;  %s323_s0 = inlined_call_operand.hbm [shape: f32[8,128], index: 0, kind: input, shape index: {}]   ;;  %s324_s1 = inlined_call_operand.hbm [shape: f32[8,128], index: 1, kind: input, shape index: {}]   ;;  %s325_s2 = inlined_call_operand.hbm [shape: f32[8,128], index: 2, kind: input, shape index: {}]   ;;  %s326_s3 = inlined_call_operand.vmem [shape: f32[8,128], index: 3, kind: input, shape index: {}]   ;;  %s327_s4 = inlined_call_operand.hbm [shape: f32[1,1], index: 4, kind: output, shape index: {}]  }
   0x1   :  { %10 = vsyncpa [#allocation7], 0 }
   0x2   :  { %11 = vsyncpa [#allocation5], 0  ;;  %s243_s15 = smov [#allocation6]   ;;  %s244_s17 = smov [#allocation3]  }
   0x3   :  { %s28_s16 = sshll.u32 %s243_s15, 4  ;;  %s18_s18 = sshll.u32 %s244_s17, 4  ;;  %s29_s16 = int_to_ptr.vmem [resolvable:$true] %s28_s16  ;;  %s19_s18 = int_to_ptr.vmem [resolvable:$true] %s18_s18 }
   0x4   :  { %s161_s21 = scalar_lea.hbm %s324_s1, 128 }
   0x5   :  { %p162_p0 = scmp.ne.s32.totalorder %s324_s1, %s161_s21  ;;  %p165_p1 = scmp.lt.u32.totalorder %s161_s21, %s324_s1 }
   0x7   :  { %p167_p2 = pnand %p165_p1, %p162_p0 }
   0x9   :  { %170 = shalt.err (!%p167_p2)
}
   0xa   :  { %s171_s26 = scalar_lea.vmem %s29_s16, 128  ;;  %p176_p4 = scmp.lt.s32.totalorder %s29_s16, %s29_s16 }
   0xb   :  { %p172_p3 = scmp.ne.s32.totalorder %s29_s16, %s171_s26  ;;  %p177_p5 = scmp.lt.s32.totalorder %s171_s26, %s171_s26 }
   0xd   :  { %p178_p6 = por %p177_p5, %p176_p4 }
   0xf   :  { %p179_p7 = pnand %p178_p6, %p172_p3 }
  0x11   :  { %182 = shalt.err (!%p179_p7)
}
  0x12   :  { %31 = dma.hbm_to_vmem [thread:$0]  %s324_s1, 128, %s29_s16, [#allocation7]  }
  0x13   :  { %s183_s5 = scalar_lea.hbm %s323_s0, 128 }
  0x14   :  { %p184_p8 = scmp.ne.s32.totalorder %s323_s0, %s183_s5  ;;  %p187_p9 = scmp.lt.u32.totalorder %s183_s5, %s323_s0 }
  0x16   :  { %p189_p10 = pnand %p187_p9, %p184_p8 }
  0x18   :  { %192 = shalt.err (!%p189_p10)
}
  0x19   :  { %s193_s10 = scalar_lea.vmem %s19_s18, 128  ;;  %p198_p12 = scmp.lt.s32.totalorder %s19_s18, %s19_s18 }
  0x1a   :  { %p194_p11 = scmp.ne.s32.totalorder %s19_s18, %s193_s10  ;;  %p199_p13 = scmp.lt.s32.totalorder %s193_s10, %s193_s10 }
  0x1c   :  { %p200_p0 = por %p199_p13, %p198_p12 }
  0x1e   :  { %p201_p1 = pnand %p200_p0, %p194_p11 }
  0x20   :  { %204 = shalt.err (!%p201_p1)
}
  0x21   :  { %21 = dma.hbm_to_vmem [thread:$0]  %s323_s0, 128, %s19_s18, [#allocation4]  }
  0x22   :  { %s245_s12 = smov [#allocation8]   ;;  %s205_s16 = scalar_lea.hbm %s325_s2, 128 }
  0x23   :  { %s38_s13 = sshll.u32 %s245_s12, 4  ;;  %p206_p2 = scmp.ne.s32.totalorder %s325_s2, %s205_s16  ;;  %s39_s13 = int_to_ptr.vmem [resolvable:$true] %s38_s13 }
  0x24   :  { %p209_p3 = scmp.lt.u32.totalorder %s205_s16, %s325_s2 }
  0x26   :  { %p211_p4 = pnand %p209_p3, %p206_p2 }
  0x28   :  { %214 = shalt.err (!%p211_p4)
}
  0x29   :  { %s215_s22 = scalar_lea.vmem %s39_s13, 128  ;;  %p220_p6 = scmp.lt.s32.totalorder %s39_s13, %s39_s13 }
  0x2a   :  { %p216_p5 = scmp.ne.s32.totalorder %s39_s13, %s215_s22  ;;  %p221_p7 = scmp.lt.s32.totalorder %s215_s22, %s215_s22 }
  0x2c   :  { %p222_p8 = por %p221_p7, %p220_p6 }
  0x2e   :  { %p223_p9 = pnand %p222_p8, %p216_p5 }
  0x30   :  { %226 = shalt.err (!%p223_p9)
}
  0x31   :  { %41 = dma.hbm_to_vmem [thread:$0]  %s325_s2, 128, %s39_s13, [#allocation7]  }
  0x32   :  { %237 = dma.done.wait [#allocation4], 128  }
  0x33   :  { %238 = vsyncadd [#allocation4], 4294967168 }
  0x34   :  { %239 = dma.done.wait [#allocation7], 256  }
  0x35   :  { %240 = vsyncadd [#allocation7], 4294967040  ;;  %v59_v0 = vld [vmem:[#allocation3] sm:$0xff]  ;;  %v60_v2 = vld [vmem:[#allocation6] sm:$0xff]  ;;  %vm78_vm0 = vcmask 7168   ;;  %s227_s7 = scalar_lea.hbm %s327_s4, 16 }
  0x36   :  { %v62_v1 = vld [vmem:[%s326_s3] sm:$0xff]  ;;  %v66_v3 = vmul.f32 %v59_v0, %v59_v0  ;;  %v61_v5 = vld [vmem:[#allocation8] sm:$0xff]  ;;  %v94_v6 = vmul.f32 %v60_v2, %v60_v2  ;;  %p228_p10 = scmp.ne.s32.totalorder %s327_s4, %s227_s7  ;;  %p231_p11 = scmp.lt.u32.totalorder %s227_s7, %s327_s4 }
  0x37   :  { %v69_v4 = vmul.f32 %v62_v1, %v62_v1  ;;  %v97_v7 = vmul.f32 %v61_v5, %v61_v5  ;;  %v63_v8 = vmul.f32 %v62_v1, %v59_v0  ;;  %v91_v9 = vmul.f32 %v61_v5, %v60_v2 }
  0x38   :  { %67 = vadd.xlane.f32.xlu0 %v66_v3  ;;  %p233_p12 = pnand %p231_p11, %p228_p10 }
  0x39   :  { %70 = vadd.xlane.f32.xlu1 %v69_v4 }
  0x3c   :  { %95 = vadd.xlane.f32.xlu0 %v94_v6 }
  0x3d   :  { %98 = vadd.xlane.f32.xlu1 %v97_v7 }
  0x40   :  { %64 = vadd.xlane.f32.xlu0 %v63_v8 }
  0x41   :  { %92 = vadd.xlane.f32.xlu1 %v91_v9 }
  0xc5   :  { %v68_v10 = vpop.xlane.xlu0 %67 }
  0xc6   :  { %v71_v11 = vpop.xlane.xlu1 %70  ;;  %v72_v12 = vmax.f32 %v68_v10, 1e-16 }
  0xc7   :  { %v75_v13 = vmax.f32 %v71_v11, 1e-16 }
  0xc8   :  { %153 = vrsqrt.f32 %v72_v12 }
  0xc9   :  { %155 = vrsqrt.f32 %v75_v13  ;;  %v96_v14 = vpop.xlane.xlu0 %95 }
  0xca   :  { %v99_v15 = vpop.xlane.xlu1 %98  ;;  %v100_v16 = vmax.f32 %v96_v14, 1e-16 }
  0xcb   :  { %v103_v17 = vmax.f32 %v99_v15, 1e-16 }
  0xcc   :  { %157 = vrsqrt.f32 %v100_v16 }
  0xcd   :  { %159 = vrsqrt.f32 %v103_v17  ;;  %v65_v18 = vpop.xlane.xlu0 %64 }
  0xce   :  { %v93_v22 = vpop.xlane.xlu1 %92 }
  0xd2   :  { %v154_v19 = vpop.eup %153 }
  0xd3   :  { %v156_v20 = vpop.eup %155  ;;  %v74_v21 = vmul.f32 %v154_v19, %v65_v18 }
  0xd5   :  { %v77_v23 = vmul.f32 %v156_v20, %v74_v21 }
  0xd6   :  { %v158_v24 = vpop.eup %157 }
  0xd7   :  { %v160_v25 = vpop.eup %159  ;;  %v102_v26 = vmul.f32 %v158_v24, %v93_v22  ;;  %v79_v27 = vsel %vm78_vm0, %v77_v23, 0.0 }
  0xd8   :  { %80 = vadd.xlane.f32.xlu0 %v79_v27 }
  0xd9   :  { %v105_v28 = vmul.f32 %v160_v25, %v102_v26 }
  0xdb   :  { %v106_v29 = vsel %vm78_vm0, %v105_v28, 0.0 }
  0xdc   :  { %107 = vadd.xlane.f32.xlu1 %v106_v29 }
 0x165   :  { %v81_v30 = vpop.xlane.xlu0 %80 }
 0x166   :  { %v82_v31 = vrot.slane %v81_v30, 4 }
 0x168   :  { %v83_v32 = vadd.f32 %v82_v31, %v81_v30 }
 0x169   :  { %v108_v33 = vpop.xlane.xlu1 %107 }
 0x16a   :  { %v84_v34 = vrot.slane %v83_v32, 2  ;;  %v109_v35 = vrot.slane %v108_v33, 4 }
 0x16c   :  { %v110_v36 = vadd.f32 %v109_v35, %v108_v33  ;;  %v85_v37 = vadd.f32 %v84_v34, %v83_v32 }
 0x16e   :  { %v111_v38 = vrot.slane %v110_v36, 2  ;;  %v86_v39 = vrot.slane %v85_v37, 1 }
 0x170   :  { %v112_v40 = vadd.f32 %v111_v38, %v110_v36  ;;  %v87_v41 = vadd.f32 %v86_v39, %v85_v37 }
 0x172   :  { %145 = vpush %v87_v41  ;;  %v113_v42 = vrot.slane %v112_v40, 1 }
 0x174   :  { %v114_v43 = vadd.f32 %v113_v42, %v112_v40 }
 0x176   :  { %147 = vpush %v114_v43 }
 0x1a3   :  { %s146_s2 = spop %145 }
 0x1a4   :  { %s89_s3 = ssub.f32 0.0, %s146_s2 }
 0x1a6   :  { %s90_s27 = smul.f32 0.5, %s89_s3 }
 0x1a7   :  { %s148_s25 = spop %147 }
 0x1a8   :  { %s116_s26 = ssub.f32 0.0, %s148_s25 }
 0x1aa   :  { %s117_s28 = smul.f32 0.5, %s116_s26 }
 0x1ac   :  { %s118_s29 = sadd.f32 %s117_s28, %s90_s27 }
 0x1ae   :  { %s120_s30 = smul.f32 0.125, %s118_s29 }
 0x1b0   :  { %129 = sst [smem:[#allocation9]] %s120_s30 }
 0x1b1   :  { %236 = shalt.err (!%p233_p12)
}
 0x1b2   :  { %s246_s11 = smov [#allocation9]  }
 0x1b3   :  { %137 = dma.smem_to_hbm %s246_s11, 16, %s327_s4, [#allocation5]  }
 0x1b4   :  { %241 = dma.done.wait [#allocation5], 16  }
 0x1b5   :  { %242 = vsyncadd [#allocation5], 4294967280 }
 0x1b6   :  { %141 = sfence }
 0x1b7   :  { %142 = vsyncpa [#allocation4], 1 }
 0x1b8   :  { %143 = vsyncpa [#allocation7], 1 }
 0x1b9   :  { %144 = vsyncpa [#allocation5], 1 }

</bundles_post_ra>
